<compile_context>
chip_gen: v7x
topology: tpu7x:2x2x1
jax: 0.10.0
libtpu: 0.0.40
codegen_flags: <defaults>
</compile_context>

<pallas_src>
import jax
import jax.numpy as jnp
from jax import lax
from jax.experimental import pallas as pl
from jax.experimental.pallas import tpu as pltpu


def _supcon_row_kernel(inv_t_ref, b_real_ref, f_ref, lq_ref, lk_ref,
                       loss_ref, single_ref):
    q = pl.program_id(0)
    tq = loss_ref.shape[0]
    b_pad = f_ref.shape[0]

    inv_t = inv_t_ref[0, 0]                                    # SMEM f32 scalar
    b_real = b_real_ref[0, 0]                                  # SMEM i32 scalar

    # Query tile sliced from the resident key block (no second feature stream).
    row_start = pl.multiple_of(q * tq, tq)
    q_tile = f_ref[pl.ds(row_start, tq), :]                    # (TQ, D)

    # (TQ, B) similarity tile: contraction on dim 1 of both operands (NT form,
    # the flash-attention pattern) -> native transposed-RHS MXU matmul, f32 acc.
    adc = lax.dot_general(
        q_tile, f_ref[...],
        dimension_numbers=(((1,), (1,)), ((), ())),
        preferred_element_type=jnp.float32)

    # Global-coordinate masks (boolean; selects instead of float multiplies).
    rowg = lax.broadcasted_iota(jnp.int32, (tq, b_pad), 0) + row_start
    colg = lax.broadcasted_iota(jnp.int32, (tq, b_pad), 1)
    is_diag = rowg == colg
    valid = colg < b_real                                      # drop padded key cols
    keep = valid & jnp.logical_not(is_diag)                    # cols in the logsumexp

    # Row max over valid columns only (identical to the unpadded reference; the
    # shift cancels exactly in log_prob so padded columns can never leak in).
    row_max = jnp.max(jnp.where(valid, adc, jnp.float32(-3.0e38)),
                      axis=1, keepdims=True)                   # (TQ, 1)
    # (adc - max) * (1/T) == adc/T - max(adc/T) for T > 0 (one fewer full pass).
    logits = (adc - row_max) * inv_t                           # (TQ, B)

    # Positive-pair mask: labels fed in both layouts -> no in-kernel transpose.
    pos = (lq_ref[...] == lk_ref[...]) & keep                  # (TQ, B) bool
    mask_sum = jnp.sum(pos.astype(jnp.float32), axis=1, keepdims=True)
    single = (mask_sum == 0.0).astype(jnp.float32)             # (TQ, 1)

    # log Z_i over valid, non-diagonal columns.
    exp_l = jnp.where(keep, jnp.exp(logits), 0.0)
    log_z = jnp.log(jnp.sum(exp_l, axis=1, keepdims=True))     # (TQ, 1)

    # Fused masked mean log-prob:
    #   sum_j mask*log_prob = sum_j mask*logits - mask_sum * logZ
    sum_pos_logits = jnp.sum(jnp.where(pos, logits, 0.0), axis=1, keepdims=True)
    mean_log_prob_pos = (sum_pos_logits - mask_sum * log_z) / (mask_sum + single)

    loss_ref[...] = (-mean_log_prob_pos * (1.0 - single)).astype(loss_ref.dtype)
    single_ref[...] = single.astype(single_ref.dtype)


def _round_up(x, m):
    return (x + m - 1) // m * m


def _preferred_tq():
    # 2x256x256 MXU on v6e/v7x -> TQ=256; 4x128x128 on v5-class -> TQ=128.
    try:
        kind = jax.devices()[0].device_kind.lower()
    except Exception:
        return 128
    if any(tag in kind for tag in ("v2", "v3", "v4", "v5")):
        return 128
    return 256


def _choose_tiling(batch_size):
    tq = min(_preferred_tq(), _round_up(batch_size, 8))
    b_pad = _round_up(batch_size, tq)
    return tq, b_pad


def supcon_loss_pallas(features, labels, temperature=0.07):
    """features: (B, D) float array (f32 or bf16); labels: (B,) ints -> scalar loss."""
    B, D = features.shape
    tq, b_pad = _choose_tiling(B)
    d_pad = _round_up(D, 128)          # lane-dense MXU feed; zeros don't change dots
    num_q = b_pad // tq

    feats = features
    if (b_pad, d_pad) != (B, D):
        feats = jnp.zeros((b_pad, d_pad), features.dtype).at[:B, :D].set(features)

    labels_i32 = labels.astype(jnp.int32).reshape(-1)
    if b_pad != B:
        labels_i32 = jnp.concatenate(
            [labels_i32, jnp.full((b_pad - B,), -1, jnp.int32)])
    labels_col = labels_i32.reshape(b_pad, 1)
    labels_row = labels_i32.reshape(1, b_pad)

    inv_t = jnp.full((1, 1), 1.0 / float(temperature), dtype=jnp.float32)
    b_real = jnp.full((1, 1), B, dtype=jnp.int32)

    # Explicit VMEM budget when the working set exceeds the conservative scoped
    # default (resident key block is double-buffered by default, plus the live
    # (TQ, B) f32 temporaries and the streamed label/output blocks).
    feat_bytes = b_pad * d_pad * feats.dtype.itemsize
    est = 2 * (feat_bytes + b_pad * 4)            # resident blocks (x2 buffers)
    est += 2 * 3 * tq * 4                         # streamed (tq,1) blocks (x2)
    est += 5 * tq * b_pad * 4 + 2 * tq * d_pad * 4 + (1 << 20)
    cp_kwargs = dict(dimension_semantics=("parallel",))
    if est > 24 * (1 << 20):
        cp_kwargs["vmem_limit_bytes"] = min(int(est * 1.25), 100 * (1 << 20))

    loss_rows, singles = pl.pallas_call(
        _supcon_row_kernel,
        out_shape=(
            jax.ShapeDtypeStruct((b_pad, 1), jnp.float32),
            jax.ShapeDtypeStruct((b_pad, 1), jnp.float32),
        ),
        grid_spec=pltpu.PrefetchScalarGridSpec(
            num_scalar_prefetch=0,
            grid=(num_q,),
            in_specs=[
                pl.BlockSpec(memory_space=pltpu.MemorySpace.SMEM),   # 1/temperature
                pl.BlockSpec(memory_space=pltpu.MemorySpace.SMEM),   # B_real
                pl.BlockSpec((b_pad, d_pad), lambda q: (0, 0)),      # features (resident)
                pl.BlockSpec((tq, 1), lambda q: (q, 0)),             # query labels (column)
                pl.BlockSpec((1, b_pad), lambda q: (0, 0)),          # key labels (row, resident)
            ],
            out_specs=[
                pl.BlockSpec((tq, 1), lambda q: (q, 0)),
                pl.BlockSpec((tq, 1), lambda q: (q, 0)),
            ],
        ),
        compiler_params=pltpu.CompilerParams(**cp_kwargs),
    )(inv_t, b_real, feats, labels_col, labels_row)

    # Tiny O(B) epilogue outside the kernel; padded rows are discarded here.
    loss_rows = loss_rows[:B, 0]
    singles = singles[:B, 0]
    n_single = jnp.sum(singles)
    return jnp.sum(loss_rows) / (jnp.float32(B) - n_single)


def supcon_loss_ref(features, labels, temperature=0.07):
    """Pure-JAX reference mirroring the PyTorch forward exactly."""
    B = features.shape[0]
    labels = labels.reshape(-1, 1)
    mask = (labels == labels.T).astype(jnp.float32)
    adc = jnp.matmul(features.astype(jnp.float32),
                     features.astype(jnp.float32).T) / temperature
    logits_max = jnp.max(adc, axis=1, keepdims=True)
    logits = adc - logits_max
    logits_mask = 1.0 - jnp.eye(B, dtype=jnp.float32)
    mask = mask * logits_mask
    single = (mask.sum(1) == 0).astype(jnp.float32)
    exp_logits = jnp.exp(logits) * logits_mask
    log_prob = logits - jnp.log(exp_logits.sum(1, keepdims=True))
    mean_log_prob_pos = (mask * log_prob).sum(1) / (mask.sum(1) + single)
    loss = -mean_log_prob_pos * (1.0 - single)
    return loss.sum() / (B - single.sum())


if __name__ == "__main__":
    key = jax.random.PRNGKey(0)
    kf, kl = jax.random.split(key)

    B, D = 8, 32
    features = jax.random.normal(kf, (B, D), dtype=jnp.float32)
    # L2-normalize features (typical SupCon input); semantics unchanged either way.
    features = features / jnp.linalg.norm(features, axis=1, keepdims=True)
    labels = jax.random.randint(kl, (B,), 0, 4, dtype=jnp.int32)

    loss = supcon_loss_pallas(features, labels, temperature=0.07)
    loss = jax.block_until_ready(loss)

    ref = supcon_loss_ref(features, labels, temperature=0.07)
    assert jnp.allclose(loss, ref, rtol=1e-4, atol=1e-4), (loss, ref)

    print("KERNEL_OK")
</pallas_src>

<mosaic_0001>
module attributes {stable_mosaic.version = 11 : i64} {
  func.func @_supcon_row_kernel(%arg0: i32, %arg1: memref<1x1xf32, #tpu.memory_space<smem>>, %arg2: memref<1x1xi32, #tpu.memory_space<smem>>, %arg3: memref<8x128xf32, #tpu.memory_space<vmem>>, %arg4: memref<8x1xi32, #tpu.memory_space<vmem>>, %arg5: memref<1x8xi32, #tpu.memory_space<vmem>>, %arg6: memref<8x1xf32, #tpu.memory_space<vmem>>, %arg7: memref<8x1xf32, #tpu.memory_space<vmem>>) attributes {dimension_semantics = [#tpu.dimension_semantics<parallel>], iteration_bounds = array<i64: 1>, scalar_prefetch = 0 : i64, scratch_operands = 0 : i64, tpu.core_type = #tpu.core_type<tc>, window_params = [{transform_indices = @transform_0, window_bounds = array<i64: 1, 1>}, {transform_indices = @transform_1, window_bounds = array<i64: 1, 1>}, {pipeline_mode = #tpu.pipeline_mode<synchronous>, transform_indices = @transform_2, window_bounds = array<i64: 8, 128>}, {transform_indices = @transform_3, window_bounds = array<i64: 8, 1>}, {pipeline_mode = #tpu.pipeline_mode<synchronous>, transform_indices = @transform_4, window_bounds = array<i64: 1, 8>}, {transform_indices = @transform_5, window_bounds = array<i64: 8, 1>}, {transform_indices = @transform_6, window_bounds = array<i64: 8, 1>}]} {
    %c0 = arith.constant 0 : index
    %c0_0 = arith.constant 0 : index
    %0 = memref.load %arg1[%c0, %c0_0] : memref<1x1xf32, #tpu.memory_space<smem>>
    %c0_1 = arith.constant 0 : index
    %c0_2 = arith.constant 0 : index
    %1 = memref.load %arg2[%c0_1, %c0_2] : memref<1x1xi32, #tpu.memory_space<smem>>
    %c8_i32 = arith.constant 8 : i32
    %2 = arith.muli %arg0, %c8_i32 : i32
    %3 = tpu.assume_multiple %2, 8 : i32
    %4 = arith.index_cast %3 : i32 to index
    %c0_3 = arith.constant 0 : index
    %5 = vector.load %arg3[%4, %c0_3] : memref<8x128xf32, #tpu.memory_space<vmem>>, vector<8x128xf32>
    %c0_4 = arith.constant 0 : index
    %c0_5 = arith.constant 0 : index
    %6 = vector.load %arg3[%c0_4, %c0_5] : memref<8x128xf32, #tpu.memory_space<vmem>>, vector<8x128xf32>
    %cst = arith.constant dense<0.000000e+00> : vector<8x8xf32>
    %7 = tpu.matmul %5, %6, %cst {dimension_numbers = #tpu.dot_dimension_numbers<[1], [1], [0], [0], [0, 0, 1, 0], [], []>} : vector<8x128xf32>, vector<8x128xf32>, vector<8x8xf32> -> vector<8x8xf32>
    %8 = tpu.iota {dimensions = array<i32: 0>} : vector<8x8xi32>
    %9 = vector.broadcast %3 : i32 to vector<8x8xi32>
    %10 = arith.addi %8, %9 : vector<8x8xi32>
    %11 = tpu.iota {dimensions = array<i32: 1>} : vector<8x8xi32>
    %12 = arith.cmpi eq, %10, %11 : vector<8x8xi32>
    %13 = vector.broadcast %1 : i32 to vector<8x8xi32>
    %14 = arith.cmpi slt, %11, %13 : vector<8x8xi32>
    %cst_6 = arith.constant dense<true> : vector<8x8xi1>
    %15 = arith.xori %12, %cst_6 : vector<8x8xi1>
    %16 = arith.andi %14, %15 : vector<8x8xi1>
    %cst_7 = arith.constant -3.000000e+38 : f32
    %17 = vector.broadcast %cst_7 : f32 to vector<8x8xf32>
    %18 = arith.select %14, %7, %17 : vector<8x8xi1>, vector<8x8xf32>
    %cst_8 = arith.constant dense<0xFF800000> : vector<8xf32>
    %19 = vector.multi_reduction <maximumf>, %18, %cst_8 [1] : vector<8x8xf32> to vector<8xf32>
    %20 = vector.shape_cast %19 : vector<8xf32> to vector<8x1xf32>
    %21 = vector.broadcast %20 : vector<8x1xf32> to vector<8x8xf32>
    %22 = arith.subf %7, %21 : vector<8x8xf32>
    %23 = vector.broadcast %0 : f32 to vector<8x8xf32>
    %24 = arith.mulf %22, %23 : vector<8x8xf32>
    %c0_9 = arith.constant 0 : index
    %c0_10 = arith.constant 0 : index
    %25 = vector.load %arg4[%c0_9, %c0_10] : memref<8x1xi32, #tpu.memory_space<vmem>>, vector<8x1xi32>
    %c0_11 = arith.constant 0 : index
    %c0_12 = arith.constant 0 : index
    %26 = vector.load %arg5[%c0_11, %c0_12] : memref<1x8xi32, #tpu.memory_space<vmem>>, vector<1x8xi32>
    %27 = vector.broadcast %25 : vector<8x1xi32> to vector<8x8xi32>
    %28 = vector.broadcast %26 : vector<1x8xi32> to vector<8x8xi32>
    %29 = arith.cmpi eq, %27, %28 : vector<8x8xi32>
    %30 = arith.andi %29, %16 : vector<8x8xi1>
    %31 = arith.extui %30 : vector<8x8xi1> to vector<8x8xi32>
    %32 = arith.sitofp %31 : vector<8x8xi32> to vector<8x8xf32>
    %cst_13 = arith.constant dense<0.000000e+00> : vector<8xf32>
    %33 = vector.multi_reduction <add>, %32, %cst_13 [1] : vector<8x8xf32> to vector<8xf32>
    %34 = vector.shape_cast %33 : vector<8xf32> to vector<8x1xf32>
    %cst_14 = arith.constant 0.000000e+00 : f32
    %35 = vector.broadcast %cst_14 : f32 to vector<8x1xf32>
    %36 = arith.cmpf oeq, %34, %35 : vector<8x1xf32>
    %37 = arith.extui %36 : vector<8x1xi1> to vector<8x1xi32>
    %38 = arith.sitofp %37 : vector<8x1xi32> to vector<8x1xf32>
    %39 = math.exp %24 : vector<8x8xf32>
    %cst_15 = arith.constant 0.000000e+00 : f32
    %40 = vector.broadcast %cst_15 : f32 to vector<8x8xf32>
    %41 = arith.select %16, %39, %40 : vector<8x8xi1>, vector<8x8xf32>
    %cst_16 = arith.constant dense<0.000000e+00> : vector<8xf32>
    %42 = vector.multi_reduction <add>, %41, %cst_16 [1] : vector<8x8xf32> to vector<8xf32>
    %43 = vector.shape_cast %42 : vector<8xf32> to vector<8x1xf32>
    %44 = math.log %43 : vector<8x1xf32>
    %cst_17 = arith.constant 0.000000e+00 : f32
    %45 = vector.broadcast %cst_17 : f32 to vector<8x8xf32>
    %46 = arith.select %30, %24, %45 : vector<8x8xi1>, vector<8x8xf32>
    %cst_18 = arith.constant dense<0.000000e+00> : vector<8xf32>
    %47 = vector.multi_reduction <add>, %46, %cst_18 [1] : vector<8x8xf32> to vector<8xf32>
    %48 = vector.shape_cast %47 : vector<8xf32> to vector<8x1xf32>
    %49 = arith.mulf %34, %44 : vector<8x1xf32>
    %50 = arith.subf %48, %49 : vector<8x1xf32>
    %51 = arith.addf %34, %38 : vector<8x1xf32>
    %52 = arith.divf %50, %51 : vector<8x1xf32>
    %cst_19 = arith.constant 0.000000e+00 : f32
    %53 = vector.broadcast %cst_19 : f32 to vector<8x1xf32>
    %54 = arith.subf %53, %52 : vector<8x1xf32>
    %cst_20 = arith.constant 1.000000e+00 : f32
    %55 = vector.broadcast %cst_20 : f32 to vector<8x1xf32>
    %56 = arith.subf %55, %38 : vector<8x1xf32>
    %57 = arith.mulf %54, %56 : vector<8x1xf32>
    %c0_21 = arith.constant 0 : index
    %c0_22 = arith.constant 0 : index
    %58 = vector.load %arg6[%c0_21, %c0_22] : memref<8x1xf32, #tpu.memory_space<vmem>>, vector<8x1xf32>
    tpu.vector_store %arg6[%c0_21, %c0_22], %57 {strides = array<i32>} : memref<8x1xf32, #tpu.memory_space<vmem>>, vector<8x1xf32>,
    %c0_23 = arith.constant 0 : index
    %c0_24 = arith.constant 0 : index
    %59 = vector.load %arg7[%c0_23, %c0_24] : memref<8x1xf32, #tpu.memory_space<vmem>>, vector<8x1xf32>
    tpu.vector_store %arg7[%c0_23, %c0_24], %38 {strides = array<i32>} : memref<8x1xf32, #tpu.memory_space<vmem>>, vector<8x1xf32>,
    return
  }
  func.func @transform_0(%arg0: i32) -> (i32, i32) {
    %c0_i32 = arith.constant 0 : i32
    %c0_i32_0 = arith.constant 0 : i32
    %c0_i32_1 = arith.constant 0 : i32
    return %c0_i32, %c0_i32_0 : i32, i32
  }
  func.func @transform_1(%arg0: i32) -> (i32, i32) {
    %c0_i32 = arith.constant 0 : i32
    %c0_i32_0 = arith.constant 0 : i32
    %c0_i32_1 = arith.constant 0 : i32
    return %c0_i32, %c0_i32_0 : i32, i32
  }
  func.func @transform_2(%arg0: i32) -> (i32, i32) {
    %c0_i32 = arith.constant 0 : i32
    %c0_i32_0 = arith.constant 0 : i32
    %c0_i32_1 = arith.constant 0 : i32
    return %c0_i32, %c0_i32_0 : i32, i32
  }
  func.func @transform_3(%arg0: i32) -> (i32, i32) {
    %c0_i32 = arith.constant 0 : i32
    %c0_i32_0 = arith.constant 0 : i32
    return %arg0, %c0_i32 : i32, i32
  }
  func.func @transform_4(%arg0: i32) -> (i32, i32) {
    %c0_i32 = arith.constant 0 : i32
    %c0_i32_0 = arith.constant 0 : i32
    %c0_i32_1 = arith.constant 0 : i32
    return %c0_i32, %c0_i32_0 : i32, i32
  }
  func.func @transform_5(%arg0: i32) -> (i32, i32) {
    %c0_i32 = arith.constant 0 : i32
    %c0_i32_0 = arith.constant 0 : i32
    return %arg0, %c0_i32 : i32, i32
  }
  func.func @transform_6(%arg0: i32) -> (i32, i32) {
    %c0_i32 = arith.constant 0 : i32
    %c0_i32_0 = arith.constant 0 : i32
    return %arg0, %c0_i32 : i32, i32
  }
}

</mosaic_0001>

<bundles_post_ra>
// kernel: tpu_custom_call.1
= control target key start
LH: loop header
LB: loop body
LE: loop exit
PB: predicated region body
PF: predicated region fallthrough
CT: control target
= control target key end

     0   :  { %v190_v0 = vmov 0.0   ;;  %vm191_vm0 = vmmov 0   ;;  %v192_v2 = vmov 0   ;;  %v100_v3 = vlaneseq  ;;  %s264_s2 = inlined_call_operand.vmem [shape: f32[8,128], index: 2, kind: input, shape index: {}]   ;;  %s265_s1 = inlined_call_operand.<no memory space> [shape: s32[1,1], index: 1, kind: input, shape index: {}]   ;;  %s266_s3 = inlined_call_operand.vmem [shape: s32[8,1], index: 3, kind: input, shape index: {}]   ;;  %s267_s0 = inlined_call_operand.<no memory space> [shape: f32[1,1], index: 0, kind: input, shape index: {}]   ;;  %s268_s4 = inlined_call_operand.vmem [shape: s32[1,8], index: 4, kind: input, shape index: {}]   ;;  %s269_s6 = inlined_call_operand.vmem [shape: f32[8,1], index: 6, kind: output, shape index: {1}]   ;;  %s270_s5 = inlined_call_operand.vmem [shape: f32[8,1], index: 5, kind: output, shape index: {0}]  }
   0x1   :  { %174 = vmatprep.subr.mxu0 %v190_v0  ;;  %v29_v1 = vld [vmem:[%s264_s2] sm:$0xff]  ;;  %176 = vmatprep.mubr.msk.f32.mxu0 %vm191_vm0, %v190_v0  ;;  %v107_v5 = vstv %s265_s1  ;;  %vm112_vm2 = vcmask 64512   ;;  %v117_v14 = vstv %s267_s0  ;;  %vm193_vm4 = vmmov 1  }
   0x2   :  { %175 = vmatpush3.xpose.msra.mxu0 %v29_v1  ;;  %183 = vset.pattern.permute.xlu0 %v192_v2  ;;  %v105_v4 = vand.u32 127, %v100_v3  ;;  %v119_v11 = vld [vmem:[%s266_s3] sm:$0xff]  ;;  %v101_v12 = vshrl.u32 %v100_v3, 7  ;;  %vm158_vm9 = vcmask 7168  }
   0x3   :  { %v169_v18 = vld [vmem:[%s268_s4] ss:$0 sm:$0xff] }
   0x4   :  { %vm235_vm1 = vcmp.lt.s32.totalorder %v105_v4, %v107_v5  ;;  %vm106_vm3 = vcmp.eq.s32.totalorder %v101_v12, %v105_v4 }
   0x5   :  { %177 = vmatmul.mubr.f32.vlgmr.msra.gmra.mrb[0].mxu0 %v29_v1  ;;  %vm109_vm5 = vmxor %vm106_vm3, %vm193_vm4 }
   0x6   :  { %vm110_vm6 = vmand %vm235_vm1, %vm109_vm5 }
  0xd8   :  { %v96_v7 = vpop.f32.mrb[0].mxu0 }
  0xd9   :  { %v178_v8 = vpop.f32.mrb[1].mxu0  ;;  %v111_v9 = vsel %vm235_vm1, %v96_v7, -3e+38 }
  0xda   :  { %v113_v10 = vsel %vm112_vm2, %v111_v9, -inf }
  0xdb   :  { %114 = vmax.xlane.f32.xlu0 %v113_v10 }
  0xf1   :  { %122 = vperm.xlu0 %183, %v119_v11  }
 0x168   :  { %v115_v13 = vpop.xlane.xlu0 %114 }
 0x169   :  { %v116_v15 = vsub.f32 %v96_v7, %v115_v13 }
 0x16b   :  { %v118_v16 = vmul.f32 %v117_v14, %v116_v15 }
 0x16d   :  { %v138_v17 = vmul.f32 1.442695, %v118_v16 }
 0x16f   :  { %184 = vpow2.f32 %v138_v17 }
 0x170   :  { %v123_v19 = vpop.permute.xlu0 %122 }
 0x171   :  { %vm128_vm7 = vcmp.eq.s32.totalorder %v123_v19, %v169_v18 }
 0x172   :  { %vm129_vm8 = vmand %vm128_vm7, %vm110_vm6 }
 0x173   :  { %v146_v20 = vsel %vm129_vm8, %v118_v16, 0.0  ;;  %v170_v23 = vsel %vm129_vm8, 1.0, %v190_v0 }
 0x174   :  { %v132_v25 = vsel %vm112_vm2, %v170_v23, 0.0  ;;  %v147_v26 = vsel %vm112_vm2, %v146_v20, 0.0 }
 0x179   :  { %v185_v21 = vpop.eup %184 }
 0x17a   :  { %v140_v22 = vsel %vm110_vm6, %v185_v21, 0.0 }
 0x17b   :  { %v141_v24 = vsel %vm112_vm2, %v140_v22, 0.0 }
 0x17c   :  { %142 = vadd.xlane.f32.xlu1 %v141_v24 }
 0x180   :  { %133 = vadd.xlane.f32.xlu1 %v132_v25 }
 0x184   :  { %148 = vadd.xlane.f32.xlu1 %v147_v26 }
 0x209   :  { %v143_v27 = vpop.xlane.xlu1 %142 }
 0x20a   :  { %186 = vlog2.f32 %v143_v27 }
 0x20d   :  { %v134_v28 = vpop.xlane.xlu1 %133 }
 0x20e   :  { %vm135_vm10 = vcmp.eq.f32.partialorder %v134_v28, 0.0 }
 0x20f   :  { %v171_v29 = vsel %vm135_vm10, 1.0, %v190_v0 }
 0x210   :  { %v152_v30 = vadd.f32 %v171_v29, %v134_v28  ;;  %160 = vst.msk [vmem:[%s269_s6] sm:$0xff] %vm158_vm9, %v171_v29  ;;  %v156_v38 = vsub.f32 1.0, %v171_v29 }
 0x211   :  { %v149_v34 = vpop.xlane.xlu1 %148 }
 0x212   :  { %188 = vrcp.f32 %v152_v30 }
 0x214   :  { %v187_v31 = vpop.eup %186 }
 0x215   :  { %v145_v32 = vmul.f32 0.6931472, %v187_v31 }
 0x217   :  { %v150_v33 = vmul.f32 %v145_v32, %v134_v28 }
 0x219   :  { %v151_v35 = vsub.f32 %v149_v34, %v150_v33 }
 0x21c   :  { %v189_v36 = vpop.eup %188 }
 0x21d   :  { %v154_v37 = vmul.f32 %v189_v36, %v151_v35 }
 0x21f   :  { %v155_v39 = vsub.f32 0.0, %v154_v37 }
 0x221   :  { %v157_v40 = vmul.f32 %v156_v38, %v155_v39 }
 0x223   :  { %159 = vst.msk [vmem:[%s270_s5] sm:$0xff] %vm158_vm9, %v157_v40 }

</bundles_post_ra>
